<compile_context>
chip_gen: v5e
topology: v5e:2x2
jax: 0.10.0
libtpu: 0.0.40
codegen_flags: <defaults>
</compile_context>

<pallas_src>
import jax
import jax.numpy as jnp
from jax import lax
from jax.experimental import pallas as pl
from jax.experimental.pallas import tpu as pltpu


def _conv_prelu_kernel(p_ref, w_ref, b_ref, a_ref, o_ref):
    # p_ref: (1, K, HW)    bf16 im2col patches for one image (K = 9*Cin)
    # w_ref: (Cout, K)     bf16 conv weights
    # b_ref: (Cout, 1)     f32 bias column
    # a_ref: (1,)          f32 PReLU alpha, in SMEM
    # o_ref: (1, Cout, HW) f32 output; HW is a multiple of 128 -> full-width vst
    acc = jnp.dot(w_ref[...], p_ref[0], preferred_element_type=jnp.float32)
    acc = acc + b_ref[...]                        # (Cout,1) broadcast over HW (VPU)
    alpha = a_ref[0]
    acc = jnp.where(acc >= 0, acc, alpha * acc)   # PReLU (shared scalar alpha)
    o_ref[0] = acc.astype(o_ref.dtype)            # (Cout, HW), no relayout needed


def conv3x3_bias_prelu(x_nchw, w_oihw, bias, alpha):
    """3x3 conv (pad=1) + bias + PReLU; returns (N, Cout, H*W) float32."""
    N, Cin, H, W = x_nchw.shape
    Cout = w_oihw.shape[0]
    K = 9 * Cin
    HW = H * W

    # Spatial zero-pad in NCHW (padding=1); im2col with channel-major tap order
    # so k = c*9 + dy*3 + dx matches w_oihw.reshape(Cout, Cin*3*3) exactly.
    x_pad = jnp.pad(x_nchw, ((0, 0), (0, 0), (1, 1), (1, 1)))
    taps = [x_pad[:, :, dy:dy + H, dx:dx + W] for dy in range(3) for dx in range(3)]
    patches = jnp.stack(taps, axis=2)                # (N, Cin, 9, H, W)
    patches = patches.reshape(N, K, HW).astype(jnp.bfloat16)

    w_mat = w_oihw.reshape(Cout, K).astype(jnp.bfloat16)
    b_col = bias.reshape(Cout, 1).astype(jnp.float32)
    a_smem = jnp.asarray(alpha, jnp.float32).reshape(1)

    cost = pl.CostEstimate(
        flops=2 * N * Cout * K * HW,
        transcendentals=0,
        bytes_accessed=(patches.size + w_mat.size) * 2
        + (b_col.size + N * Cout * HW) * 4,
    )

    out = pl.pallas_call(
        _conv_prelu_kernel,
        out_shape=jax.ShapeDtypeStruct((N, Cout, HW), jnp.float32),
        grid_spec=pltpu.PrefetchScalarGridSpec(
            num_scalar_prefetch=0,
            grid=(N,),
            in_specs=[
                pl.BlockSpec((1, K, HW), lambda n: (n, 0, 0)),
                pl.BlockSpec((Cout, K), lambda n: (0, 0)),
                pl.BlockSpec((Cout, 1), lambda n: (0, 0)),
                pl.BlockSpec(memory_space=pltpu.MemorySpace.SMEM),
            ],
            out_specs=pl.BlockSpec((1, Cout, HW), lambda n: (n, 0, 0)),
        ),
        compiler_params=pltpu.CompilerParams(
            dimension_semantics=("parallel",),
        ),
        cost_estimate=cost,
    )(patches, w_mat, b_col, a_smem)
    return out  # (N, Cout, H*W); channel index = c*r^2 + i*r + j


def upsample_block(x_nchw, w, b, alpha, up_scale):
    """conv3x3 -> pixel_shuffle -> PReLU (PReLU fused before the shuffle)."""
    N, Cin, H, W = x_nchw.shape
    r = up_scale
    y = conv3x3_bias_prelu(x_nchw, w, b, alpha)      # (N, Cin*r*r, H*W)
    # Pixel shuffle: conv channel index = c*r^2 + i*r + j.
    y = y.reshape(N, Cin, r, r, H, W)                # [n, c, i, j, h, w]
    y = jnp.transpose(y, (0, 1, 4, 2, 5, 3))         # [n, c, h, i, w, j]
    return y.reshape(N, Cin, H * r, W * r).astype(x_nchw.dtype)


if __name__ == "__main__":
    # Module config: in_channels=4, up_scale=2 -> conv out channels = 16.
    in_channels = 4
    up_scale = 2
    out_channels = in_channels * up_scale ** 2
    N, H, W = 2, 16, 16

    key = jax.random.PRNGKey(0)
    kx, kw, kb = jax.random.split(key, 3)

    x = jax.random.normal(kx, (N, in_channels, H, W), jnp.float32)
    w = jax.random.normal(kw, (out_channels, in_channels, 3, 3), jnp.float32) * 0.1
    b = jax.random.normal(kb, (out_channels,), jnp.float32) * 0.1
    alpha = jnp.float32(0.25)  # nn.PReLU() default init

    out = upsample_block(x, w, b, alpha, up_scale)
    jax.block_until_ready(out)

    expected_shape = (N, in_channels, H * up_scale, W * up_scale)
    assert out.shape == expected_shape, (out.shape, expected_shape)

    # Reference: XLA conv -> pixel shuffle -> PReLU (matches the PyTorch module).
    ref = lax.conv_general_dilated(
        x, w, window_strides=(1, 1), padding=((1, 1), (1, 1)),
        dimension_numbers=("NCHW", "OIHW", "NCHW"),
        precision=lax.Precision.HIGHEST) + b.reshape(1, -1, 1, 1)
    r = up_scale
    ref = ref.reshape(N, out_channels // (r * r), r, r, H, W)
    ref = jnp.transpose(ref, (0, 1, 4, 2, 5, 3)).reshape(
        N, out_channels // (r * r), H * r, W * r)
    ref = jnp.where(ref >= 0, ref, alpha * ref)

    # Kernel matmul uses bf16 inputs with f32 accumulation -> tolerance sized
    # for bf16 input quantization (accumulation itself is exact f32).
    err = float(jnp.max(jnp.abs(out - ref)))
    assert jnp.allclose(out, ref, atol=3e-2, rtol=3e-2), err

    print("KERNEL_OK")
</pallas_src>

<mosaic_0001>
module attributes {stable_mosaic.version = 11 : i64} {
  func.func @_conv_prelu_kernel(%arg0: i32, %arg1: memref<1x36x256xbf16, #tpu.memory_space<vmem>>, %arg2: memref<16x36xbf16, #tpu.memory_space<vmem>>, %arg3: memref<16x1xf32, #tpu.memory_space<vmem>>, %arg4: memref<1xf32, #tpu.memory_space<smem>>, %arg5: memref<1x16x256xf32, #tpu.memory_space<vmem>>) attributes {dimension_semantics = [#tpu.dimension_semantics<parallel>], iteration_bounds = array<i64: 2>, scalar_prefetch = 0 : i64, scratch_operands = 0 : i64, tpu.core_type = #tpu.core_type<tc>, window_params = [{transform_indices = @transform_0, window_bounds = array<i64: 1, 36, 256>}, {pipeline_mode = #tpu.pipeline_mode<synchronous>, transform_indices = @transform_1, window_bounds = array<i64: 16, 36>}, {pipeline_mode = #tpu.pipeline_mode<synchronous>, transform_indices = @transform_2, window_bounds = array<i64: 16, 1>}, {transform_indices = @transform_3, window_bounds = array<i64: 1>}, {transform_indices = @transform_4, window_bounds = array<i64: 1, 16, 256>}]} {
    %c0 = arith.constant 0 : index
    %c0_0 = arith.constant 0 : index
    %0 = vector.load %arg2[%c0, %c0_0] : memref<16x36xbf16, #tpu.memory_space<vmem>>, vector<16x36xbf16>
    %c0_1 = arith.constant 0 : index
    %c0_2 = arith.constant 0 : index
    %c0_3 = arith.constant 0 : index
    %1 = vector.load %arg1[%c0_1, %c0_2, %c0_3] : memref<1x36x256xbf16, #tpu.memory_space<vmem>>, vector<1x36x256xbf16>
    %2 = vector.shape_cast %1 : vector<1x36x256xbf16> to vector<36x256xbf16>
    %cst = arith.constant dense<0.000000e+00> : vector<16x256xf32>
    %3 = tpu.matmul %0, %2, %cst {dimension_numbers = #tpu.dot_dimension_numbers<[1], [0], [0], [1], [0, 0, 1, 1], [], []>} : vector<16x36xbf16>, vector<36x256xbf16>, vector<16x256xf32> -> vector<16x256xf32>
    %c0_4 = arith.constant 0 : index
    %c0_5 = arith.constant 0 : index
    %4 = vector.load %arg3[%c0_4, %c0_5] : memref<16x1xf32, #tpu.memory_space<vmem>>, vector<16x1xf32>
    %5 = vector.broadcast %4 : vector<16x1xf32> to vector<16x256xf32>
    %6 = arith.addf %3, %5 : vector<16x256xf32>
    %c0_6 = arith.constant 0 : index
    %7 = memref.load %arg4[%c0_6] : memref<1xf32, #tpu.memory_space<smem>>
    %cst_7 = arith.constant 0.000000e+00 : f32
    %8 = vector.broadcast %cst_7 : f32 to vector<16x256xf32>
    %9 = arith.cmpf oge, %6, %8 : vector<16x256xf32>
    %10 = vector.broadcast %7 : f32 to vector<16x256xf32>
    %11 = arith.mulf %10, %6 : vector<16x256xf32>
    %12 = arith.select %9, %6, %11 : vector<16x256xi1>, vector<16x256xf32>
    %c0_8 = arith.constant 0 : index
    %c0_9 = arith.constant 0 : index
    %c0_10 = arith.constant 0 : index
    %13 = vector.load %arg5[%c0_8, %c0_9, %c0_10] : memref<1x16x256xf32, #tpu.memory_space<vmem>>, vector<1x16x256xf32>
    %14 = vector.shape_cast %13 : vector<1x16x256xf32> to vector<16x256xf32>
    %15 = vector.shape_cast %12 : vector<16x256xf32> to vector<1x16x256xf32>
    tpu.vector_store %arg5[%c0_8, %c0_9, %c0_10], %15 {strides = array<i32>} : memref<1x16x256xf32, #tpu.memory_space<vmem>>, vector<1x16x256xf32>,
    return
  }
  func.func @transform_0(%arg0: i32) -> (i32, i32, i32) {
    %c0_i32 = arith.constant 0 : i32
    %c0_i32_0 = arith.constant 0 : i32
    %c0_i32_1 = arith.constant 0 : i32
    return %arg0, %c0_i32, %c0_i32_0 : i32, i32, i32
  }
  func.func @transform_1(%arg0: i32) -> (i32, i32) {
    %c0_i32 = arith.constant 0 : i32
    %c0_i32_0 = arith.constant 0 : i32
    %c0_i32_1 = arith.constant 0 : i32
    return %c0_i32, %c0_i32_0 : i32, i32
  }
  func.func @transform_2(%arg0: i32) -> (i32, i32) {
    %c0_i32 = arith.constant 0 : i32
    %c0_i32_0 = arith.constant 0 : i32
    %c0_i32_1 = arith.constant 0 : i32
    return %c0_i32, %c0_i32_0 : i32, i32
  }
  func.func @transform_3(%arg0: i32) -> i32 {
    %c0_i32 = arith.constant 0 : i32
    %c0_i32_0 = arith.constant 0 : i32
    return %c0_i32 : i32
  }
  func.func @transform_4(%arg0: i32) -> (i32, i32, i32) {
    %c0_i32 = arith.constant 0 : i32
    %c0_i32_0 = arith.constant 0 : i32
    %c0_i32_1 = arith.constant 0 : i32
    return %arg0, %c0_i32, %c0_i32_0 : i32, i32, i32
  }
}

</mosaic_0001>

<bundles_post_ra>
// kernel: tpu_custom_call.1
= control target key start
LH: loop header
LB: loop body
LE: loop exit
PB: predicated region body
PF: predicated region fallthrough
CT: control target
= control target key end

     0   :  { %s658_s0 = inlined_call_operand.vmem [shape: bf16[2,36,256], index: 0, kind: input, shape index: {}]   ;;  %s659_s1 = inlined_call_operand.vmem [shape: bf16[16,36], index: 1, kind: input, shape index: {}]   ;;  %s660_s2 = inlined_call_operand.vmem [shape: f32[16,1], index: 2, kind: input, shape index: {}]   ;;  %s661_s3 = inlined_call_operand.<no memory space> [shape: f32[1], index: 3, kind: input, shape index: {}]   ;;  %s662_s4 = inlined_call_operand.hbm [shape: f32[2,16,256], index: 4, kind: output, shape index: {}]  }
   0x1   :  { %9 = sst [smem:[#allocation2]] %s661_s3 }
   0x2   :  { %10 = vsyncpa [#allocation4], 0 }
   0x3   :  { %12 = vsyncpa [#allocation4 + $0x1], 0  ;;  %s560_s17 = smov 0   ;;  %s562_s18 = smov 0  }
   0x4   :  { %s564_s19 = smov 0   ;;  %s566_s20 = smov 0  }
   0x5 LB: > { %s581_s3 = sadd.s32 4294967295, %s527_s20   ;;  %s382_s21 = sadd.s32 4294967294, %s527_s20   ;;  %s527_s20 = sphi %s566_s20, %s668_s20   ;;  %s523_s19 = sphi %s564_s19, %s667_s19   ;;  %s519_s18 = sphi %s562_s18, %s666_s18   ;;  %s515_s17 = sphi %s560_s17, %s665_s17  }
   0x6   : > { %s585_s22 = sadd.s32 1, %s527_s20   ;;  %s114_s23 = sadd.s32 1, %s523_s19 }
   0x7   : > { %s111_s24 = ssub.s32 %s527_s20, %s585_s22  ;;  %p124_p0 = scmp.ne.s32.totalorder %s523_s19, %s519_s18 }
   0x8   : > { %p112_p1 = scmp.eq.s32.totalorder %s111_s24, 0  ;;  %p125_p2 = scmp.eq.s32.totalorder %s581_s3, 1 }
   0x9   : > { %p130_p3 = scmp.ne.s32.totalorder %s519_s18, %s515_s17  ;;  %p131_p4 = scmp.eq.s32.totalorder %s382_s21, 1 }
   0xa   : > { %s596_s25 = scalar_select %p112_p1, %s523_s19, %s114_s23  }
   0xb   : > { %p598_p5 = por %p125_p2, %p124_p0  ;;  %p602_p6 = por %p131_p4, %p130_p3 }
   0xc   : > { %p385_p7 = scmp.ge.s32.totalorder %s527_s20, 1  ;;  %p166_p8 = scmp.lt.s32.totalorder %s527_s20, 3 }
   0xe   : > { %p167_p9 = pnand %p385_p7, %p166_p8 }
   0xf   : > { %p192_p10 = scmp.lt.s32.totalorder (!%p167_p9), %s581_s3, 1  ;;  %s286_s13 = sld [smem:[#allocation2]] (!%p167_p9) }
  0x10   : > { %170 = sbr.rel (%p167_p9) target bundleno = 187 (0xbb), region = 36  ;;  %s189_s14 = sand.u32 (!%p167_p9), 1, %s519_s18  }
  0x11   : > { %s386_s15 = sshll.u32 (!%p167_p9), %s189_s14, 5  ;;  %s420_s16 = sshll.u32 (!%p167_p9), %s581_s3, 5 }
  0x12   : > { %s191_s21 = scalar_lea.vmem (!%p167_p9), [#allocation3], %s386_s15  ;;  %s316_s28 = scalar_lea.hbm (!%p167_p9), %s662_s4, %s420_s16 }
  0x13   : > { %s317_s29 = sshll.u32 (!%p167_p9), %s191_s21, 4  ;;  %s485_s9 = scalar_lea.hbm (!%p167_p9), %s662_s4, 64  ;;  %s318_s29 = int_to_ptr.vmem [resolvable:$true] %s317_s29 }
  0x15   : > { %v205_v0 = vld [vmem:[%s660_s2] sm:$0xff]  ;;  %v529_v1 = vmov 0   ;;  %s193_s30 = scalar_select %p192_p10, %s581_s3, 1  ;;  %v206_v3 = vld [vmem:[%s660_s2 + $0x8] sm:$0xff]  ;;  %vm251_vm0 = vcmask 1041408   ;;  %vm247_vm1 = vcmask 293888   ;;  %v291_v25 = vstv %s286_s13 }
  0x16   : > { %464 = vset.pattern.permute.xlu0 %v529_v1  ;;  %v415_v22 = vld [vmem:[%s659_s1] sm:$0xff]  ;;  %s305_s3 = scalar_lea.sflag [#allocation4], %s189_s14 }
  0x17   : > { %209 = vperm.xlu0 %464, %v205_v0   ;;  %s421_s5 = smul.u32 40, %s193_s30  ;;  %s319_s30 = sshll.u32 %s316_s28, 4  ;;  %s320_s30 = int_to_ptr.hbm [resolvable:$true] %s319_s30 }
  0x19   : > { %s196_s8 = scalar_lea.vmem %s658_s0, %s421_s5  ;;  %s479_s5 = sshra.s32 %s320_s30, 4  ;;  %s480_s5 = int_to_ptr.hbm [resolvable:$true] %s479_s5 }
  0x1a   : > { %v204_v2 = vld [vmem:[%s196_s8 + $0x20] sm:$0x33]  ;;  %v402_v6 = vld [vmem:[%s196_s8 + $0x10] sm:$0xf]  ;;  %v419_v9 = vld [vmem:[%s196_s8 + $0x14] sm:$0xf0]  ;;  %p486_p0 = scmp.lt.s32.totalorder %s480_s5, %s662_s4 }
  0x1b   : > { %v235_v4 = vunpack.c.l.b16 %v204_v2  ;;  %v236_v5 = vunpack.c.h.b16 %v204_v2  ;;  %v418_v10 = vld [vmem:[%s196_s8 + $0x14] sm:$0xf]  ;;  %v404_v11 = vld [vmem:[%s196_s8 + $0x18] sm:$0xf0]  ;;  %v403_v14 = vor.u32 %v419_v9, %v402_v6  ;;  %v394_v16 = vld [vmem:[%s196_s8] sm:$0xf] }
  0x1c   : > { %v407_v15 = vor.u32 %v418_v10, %v404_v11  ;;  %v417_v17 = vld [vmem:[%s196_s8 + $0x4] sm:$0xf0]  ;;  %v416_v18 = vld [vmem:[%s196_s8 + $0x4] sm:$0xf]  ;;  %v396_v19 = vld [vmem:[%s196_s8 + $0x8] sm:$0xf0] }
  0x1d   : > { %v241_v7 = vpack.c.b16 %v235_v4, %v235_v4  ;;  %v242_v8 = vpack.c.b16 %v236_v5, %v236_v5  ;;  %v395_v20 = vor.u32 %v417_v17, %v394_v16  ;;  %v399_v21 = vor.u32 %v416_v18, %v396_v19  ;;  %s481_s6 = scalar_lea.hbm %s480_s5, 32 }
  0x1e   : > { %p482_p11 = scmp.ne.s32.totalorder %s480_s5, %s481_s6  ;;  %p487_p1 = scmp.lt.s32.totalorder %s485_s9, %s481_s6 }
  0x1f   : > { %214 = vperm.xlu0 %464, %v206_v3   ;;  %v253_v12 = vsel %vm251_vm0, %v241_v7, 0  ;;  %v256_v13 = vsel %vm251_vm0, %v242_v8, 0 }
  0x20   : > { %263 = vmatpush.bf16.msra.mxu0 %v253_v12  ;;  %277 = vmatpush.bf16.msra.mxu1 %v256_v13  ;;  %p483_p12 = pnand %p482_p11, %p598_p5  ;;  %p488_p2 = por %p487_p1, %p486_p0 }
  0x22   : > { %p484_p13 = pneg %p483_p12 }
  0x24   : > { %264 = vmatpush.bf16.msra.mxu0 %v403_v14  ;;  %278 = vmatpush.bf16.msra.mxu1 %v407_v15  ;;  %p489_p3 = pnand %p488_p2, %p484_p13 }
  0x28   : > { %265 = vmatpush.bf16.msra.mxu0 %v395_v20  ;;  %279 = vmatpush.bf16.msra.mxu1 %v399_v21 }
  0x2b   : > { %408 = vmatmul.msk.bf16.vlgmr.msra.gmra.mxu0 %vm247_vm1, %v415_v22  ;;  %409 = vmatmul.msk.bf16.vlgmr.msra.gmra.mxu1 %vm247_vm1, %v415_v22 }
  0x89   : > { %v210_v23 = vpop.permute.xlu0 %209 }
  0x91   : > { %v215_v33 = vpop.permute.xlu0 %214 }
  0xa8   : > { %v267_v24 = vpop.f32.mrf.mxu0  ;;  %v281_v26 = vpop.f32.mrf.mxu1 }
  0xa9   : > { %v268_v27 = vadd.f32 %v267_v24, %v210_v23  ;;  %v282_v28 = vadd.f32 %v281_v26, %v210_v23 }
  0xab   : > { %vm287_vm2 = vcmp.ge.f32.partialorder %v268_v27, 0.0  ;;  %v292_v29 = vmul.f32 %v291_v25, %v268_v27  ;;  %vm288_vm3 = vcmp.ge.f32.partialorder %v282_v28, 0.0  ;;  %v293_v30 = vmul.f32 %v291_v25, %v282_v28 }
  0xad   : > { %v296_v31 = vsel %vm287_vm2, %v268_v27, %v292_v29  ;;  %v297_v32 = vsel %vm288_vm3, %v282_v28, %v293_v30 }
  0xae   : > { %300 = vst [vmem:[%s191_s21] sm:$0xff] %v296_v31 }
  0xaf   : > { %301 = vst [vmem:[%s191_s21 + $0x8] sm:$0xff] %v297_v32 }
  0xb0   : > { %v269_v34 = vpop.f32.mrf.mxu0  ;;  %v283_v35 = vpop.f32.mrf.mxu1 }
  0xb1   : > { %v270_v36 = vadd.f32 %v269_v34, %v215_v33  ;;  %v284_v37 = vadd.f32 %v283_v35, %v215_v33 }
  0xb3   : > { %vm289_vm4 = vcmp.ge.f32.partialorder %v270_v36, 0.0  ;;  %v294_v38 = vmul.f32 %v291_v25, %v270_v36  ;;  %vm290_vm5 = vcmp.ge.f32.partialorder %v284_v37, 0.0  ;;  %v295_v39 = vmul.f32 %v291_v25, %v284_v37 }
  0xb5   : > { %v298_v40 = vsel %vm289_vm4, %v270_v36, %v294_v38  ;;  %v299_v41 = vsel %vm290_vm5, %v284_v37, %v295_v39 }
  0xb6   : > { %302 = vst [vmem:[%s191_s21 + $0x10] sm:$0xff] %v298_v40 }
  0xb7   : > { %303 = vst [vmem:[%s191_s21 + $0x18] sm:$0xff] %v299_v41 }
  0xb8   : > { %492 = shalt.err (!%p489_p3)
}
  0xb9   : > { %s530_s12 = smov 256   ;;  %s531_s13 = smov 16  }
  0xba   : > { %422 = dma.vmem_to_hbm [thread:$0]  (%p598_p5), %s318_s29, 512, %s320_s30, %s305_s3, %s530_s12, %s530_s12, %s531_s13  }
  0xbb PF: > { %p428_p4 = scmp.ge.s32.totalorder %s527_s20, 2  ;;  %s334_s14 = sand.u32 1, %s515_s17  }
  0xbc   : > { %s335_s15 = scalar_lea.sflag [#allocation4], %s334_s14 }
  0xbd   : > { %p425_p7 = pnand %p428_p4, %p602_p6 }
  0xbf   : > { %p426_p8 = pneg %p425_p7 }
  0xc1   : > { %510 = dma.done.wait (%p426_p8), %s335_s15, 512  }
  0xc2   : > { %512 = vsyncadd (%p426_p8), %s335_s15, 4294966784  ;;  %p15_p9 = scmp.ge.s32.totalorder %s585_s22, 4   ;;  %s665_s17 = smov %s519_s18 }
  0xc3   : > { %s666_s18 = smov %s523_s19  ;;  %s667_s19 = smov %s596_s25 }
  0xc4   : > { %s668_s20 = smov %s585_s22  ;;  %17 = sbr.rel (!%p15_p9) target bundleno = 5 (0x5), region = 71 }
  0xc9   :  { %341 = vsyncpa [#allocation4], 1 }
  0xca   :  { %343 = vsyncpa [#allocation4 + $0x1], 1 }

</bundles_post_ra>
